<compile_context>
chip_gen: v6e
topology: v6e:2x2x1
jax: 0.10.0
libtpu: 0.0.40
codegen_flags: <defaults>
</compile_context>

<pallas_src>
import jax
import jax.numpy as jnp
from jax.experimental import pallas as pl
from jax.experimental.pallas import tpu as pltpu

_LANE = 128
_SUBLANE = 8


def _round_up(x: int, m: int) -> int:
    return ((x + m - 1) // m) * m


def _mt_loss_kernel(p_ref, y_ref, s_ref, num_ref, den_ref, se_acc, sel_acc):
    """Streaming masked-RMSE partial reduction.

    p_ref/y_ref/s_ref : (tile_rows, 128) input tiles (any float dtype)
    num_ref, den_ref  : (8, 128) f32 per-chunk partial sums (outputs)
    se_acc, sel_acc   : (tile_rows, 128) f32 per-lane partial sums (scratch)
    """
    i = pl.program_id(1)  # step axis (reduction, "arbitrary")

    @pl.when(i == 0)
    def _init():
        se_acc[...] = jnp.zeros_like(se_acc)
        sel_acc[...] = jnp.zeros_like(sel_acc)

    # Upcast per-tile inside the kernel (keeps HBM traffic in the input dtype).
    p = p_ref[...].astype(jnp.float32)
    y = y_ref[...].astype(jnp.float32)
    s = s_ref[...].astype(jnp.float32)

    d = p - y                      # |d|^2 == d*d for real inputs
    se_acc[...] += d * d * s       # pure VPU elementwise work per step
    sel_acc[...] += s

    @pl.when(i == pl.num_programs(1) - 1)
    def _finalize():
        # Fold the (tile_rows, 128) slabs down to one vreg-aligned (8, 128)
        # partial each; the reshape is sublane-tile aligned (free) and the sum
        # happens exactly once per chunk.
        tr = se_acc.shape[0]
        num_ref[...] = se_acc[...].reshape(tr // _SUBLANE, _SUBLANE, _LANE).sum(axis=0)
        den_ref[...] = sel_acc[...].reshape(tr // _SUBLANE, _SUBLANE, _LANE).sum(axis=0)


def mt_loss_pallas(predictions: jax.Array, y: jax.Array, selector: jax.Array,
                   *, max_tile_rows: int = 1024,
                   max_parallel_chunks: int = 2) -> jax.Array:
    """sqrt( sum((predictions - y)^2 * selector) / sum(selector) )."""
    assert predictions.size == y.size == selector.size, "shape mismatch"
    m = int(predictions.size)

    # Sublane-dense layout: (rows_padded, 128). tile_rows is a multiple of 8
    # (full [8,128] vregs); rows_padded = n_par * steps * tile_rows.
    rows = max(1, -(-m // _LANE))
    tile_rows = min(max_tile_rows, _round_up(rows, _SUBLANE))
    total_tiles = -(-rows // tile_rows)
    n_par = max_parallel_chunks if total_tiles >= max_parallel_chunks else 1
    steps = -(-total_tiles // n_par)
    rows_padded = n_par * steps * tile_rows
    total = rows_padded * _LANE

    def _prep(x):
        flat = jnp.ravel(x)
        flat = jnp.pad(flat, (0, total - m))     # zero pad (selector pad == 0)
        return flat.reshape(rows_padded, _LANE)  # keep original dtype

    p2d = _prep(predictions)
    y2d = _prep(y)
    s2d = _prep(selector)

    in_spec = pl.BlockSpec((tile_rows, _LANE), lambda p, i: (p * steps + i, 0))
    out_spec = pl.BlockSpec((_SUBLANE, _LANE), lambda p, i: (p, 0))

    num_part, den_part = pl.pallas_call(
        _mt_loss_kernel,
        out_shape=(
            jax.ShapeDtypeStruct((n_par * _SUBLANE, _LANE), jnp.float32),
            jax.ShapeDtypeStruct((n_par * _SUBLANE, _LANE), jnp.float32),
        ),
        grid_spec=pltpu.PrefetchScalarGridSpec(
            num_scalar_prefetch=0,
            grid=(n_par, steps),
            in_specs=[in_spec, in_spec, in_spec],
            out_specs=[out_spec, out_spec],
            scratch_shapes=[
                pltpu.VMEM((tile_rows, _LANE), jnp.float32),  # masked sq-err
                pltpu.VMEM((tile_rows, _LANE), jnp.float32),  # selector sum
            ],
        ),
        compiler_params=pltpu.CompilerParams(
            dimension_semantics=("parallel", "arbitrary"),
        ),
    )(p2d, y2d, s2d)

    # Tiny final combine in the wrapper: cross-chunk + cross-lane reduce,
    # one divide, one sqrt.
    return jnp.sqrt(jnp.sum(num_part) / jnp.sum(den_part))


if __name__ == "__main__":
    # Multi-task setting implied by the module: predictions / y / selector all
    # shaped (num_graphs, num_tasks); selector is a 0/1 mask of labeled tasks.
    num_graphs, num_tasks = 8, 4
    key = jax.random.PRNGKey(0)
    kp, ky, ks = jax.random.split(key, 3)

    predictions = jax.random.normal(kp, (num_graphs, num_tasks), dtype=jnp.float32)
    y = jax.random.normal(ky, (num_graphs, num_tasks), dtype=jnp.float32)
    selector = (jax.random.uniform(ks, (num_graphs, num_tasks)) > 0.5).astype(jnp.float32)
    # Guarantee a nonzero denominator.
    selector = selector.at[0, 0].set(1.0)

    loss = mt_loss_pallas(predictions, y, selector)
    jax.block_until_ready(loss)

    # Pure-JAX reference of the PyTorch module.
    sq_err = jnp.abs(predictions - y) ** 2
    ref = jnp.sqrt(jnp.sum(sq_err * selector) / jnp.sum(selector))
    assert jnp.allclose(loss, ref, rtol=1e-6, atol=1e-6), (loss, ref)

    print("KERNEL_OK")
</pallas_src>

<mosaic_0001>
module attributes {stable_mosaic.version = 11 : i64} {
  func.func @_mt_loss_kernel(%arg0: i32, %arg1: i32, %arg2: memref<8x128xf32, #tpu.memory_space<vmem>>, %arg3: memref<8x128xf32, #tpu.memory_space<vmem>>, %arg4: memref<8x128xf32, #tpu.memory_space<vmem>>, %arg5: memref<8x128xf32, #tpu.memory_space<vmem>>, %arg6: memref<8x128xf32, #tpu.memory_space<vmem>>, %arg7: memref<8x128xf32, #tpu.memory_space<vmem>>, %arg8: memref<8x128xf32, #tpu.memory_space<vmem>>) attributes {dimension_semantics = [#tpu.dimension_semantics<parallel>, #tpu.dimension_semantics<arbitrary>], iteration_bounds = array<i64: 1, 1>, scalar_prefetch = 0 : i64, scratch_operands = 2 : i64, tpu.core_type = #tpu.core_type<tc>, window_params = [{transform_indices = @transform_0, window_bounds = array<i64: 8, 128>}, {transform_indices = @transform_1, window_bounds = array<i64: 8, 128>}, {transform_indices = @transform_2, window_bounds = array<i64: 8, 128>}, {transform_indices = @transform_3, window_bounds = array<i64: 8, 128>}, {transform_indices = @transform_4, window_bounds = array<i64: 8, 128>}]} {
    %c0_i32 = arith.constant 0 : i32
    %0 = arith.cmpi eq, %arg1, %c0_i32 : i32
    %1 = arith.extui %0 : i1 to i32
    %c0_i32_0 = arith.constant 0 : i32
    %2 = arith.cmpi ne, %1, %c0_i32_0 : i32
    scf.if %2 {
      %cst = arith.constant 0.000000e+00 : f32
      %18 = vector.broadcast %cst : f32 to vector<8x128xf32>
      %c0_16 = arith.constant 0 : index
      %c0_17 = arith.constant 0 : index
      %19 = vector.load %arg7[%c0_16, %c0_17] : memref<8x128xf32, #tpu.memory_space<vmem>>, vector<8x128xf32>
      tpu.vector_store %arg7[%c0_16, %c0_17], %18 {strides = array<i32>} : memref<8x128xf32, #tpu.memory_space<vmem>>, vector<8x128xf32>,
      %cst_18 = arith.constant 0.000000e+00 : f32
      %20 = vector.broadcast %cst_18 : f32 to vector<8x128xf32>
      %c0_19 = arith.constant 0 : index
      %c0_20 = arith.constant 0 : index
      %21 = vector.load %arg8[%c0_19, %c0_20] : memref<8x128xf32, #tpu.memory_space<vmem>>, vector<8x128xf32>
      tpu.vector_store %arg8[%c0_19, %c0_20], %20 {strides = array<i32>} : memref<8x128xf32, #tpu.memory_space<vmem>>, vector<8x128xf32>,
    } else {
    }
    %c0 = arith.constant 0 : index
    %c0_1 = arith.constant 0 : index
    %3 = vector.load %arg2[%c0, %c0_1] : memref<8x128xf32, #tpu.memory_space<vmem>>, vector<8x128xf32>
    %c0_2 = arith.constant 0 : index
    %c0_3 = arith.constant 0 : index
    %4 = vector.load %arg3[%c0_2, %c0_3] : memref<8x128xf32, #tpu.memory_space<vmem>>, vector<8x128xf32>
    %c0_4 = arith.constant 0 : index
    %c0_5 = arith.constant 0 : index
    %5 = vector.load %arg4[%c0_4, %c0_5] : memref<8x128xf32, #tpu.memory_space<vmem>>, vector<8x128xf32>
    %6 = arith.subf %3, %4 : vector<8x128xf32>
    %c0_6 = arith.constant 0 : index
    %c0_7 = arith.constant 0 : index
    %7 = vector.load %arg7[%c0_6, %c0_7] : memref<8x128xf32, #tpu.memory_space<vmem>>, vector<8x128xf32>
    %8 = arith.mulf %6, %6 : vector<8x128xf32>
    %9 = arith.mulf %8, %5 : vector<8x128xf32>
    %10 = arith.addf %7, %9 : vector<8x128xf32>
    %c0_8 = arith.constant 0 : index
    %c0_9 = arith.constant 0 : index
    %11 = vector.load %arg7[%c0_8, %c0_9] : memref<8x128xf32, #tpu.memory_space<vmem>>, vector<8x128xf32>
    tpu.vector_store %arg7[%c0_8, %c0_9], %10 {strides = array<i32>} : memref<8x128xf32, #tpu.memory_space<vmem>>, vector<8x128xf32>,
    %c0_10 = arith.constant 0 : index
    %c0_11 = arith.constant 0 : index
    %12 = vector.load %arg8[%c0_10, %c0_11] : memref<8x128xf32, #tpu.memory_space<vmem>>, vector<8x128xf32>
    %13 = arith.addf %12, %5 : vector<8x128xf32>
    %c0_12 = arith.constant 0 : index
    %c0_13 = arith.constant 0 : index
    %14 = vector.load %arg8[%c0_12, %c0_13] : memref<8x128xf32, #tpu.memory_space<vmem>>, vector<8x128xf32>
    tpu.vector_store %arg8[%c0_12, %c0_13], %13 {strides = array<i32>} : memref<8x128xf32, #tpu.memory_space<vmem>>, vector<8x128xf32>,
    %c0_i32_14 = arith.constant 0 : i32
    %15 = arith.cmpi eq, %arg1, %c0_i32_14 : i32
    %16 = arith.extui %15 : i1 to i32
    %c0_i32_15 = arith.constant 0 : i32
    %17 = arith.cmpi ne, %16, %c0_i32_15 : i32
    scf.if %17 {
      %c0_16 = arith.constant 0 : index
      %c0_17 = arith.constant 0 : index
      %18 = vector.load %arg7[%c0_16, %c0_17] : memref<8x128xf32, #tpu.memory_space<vmem>>, vector<8x128xf32>
      %19 = vector.shape_cast %18 : vector<8x128xf32> to vector<1x8x128xf32>
      %cst = arith.constant dense<0.000000e+00> : vector<8x128xf32>
      %20 = vector.multi_reduction <add>, %19, %cst [0] : vector<1x8x128xf32> to vector<8x128xf32>
      %c0_18 = arith.constant 0 : index
      %c0_19 = arith.constant 0 : index
      %21 = vector.load %arg5[%c0_18, %c0_19] : memref<8x128xf32, #tpu.memory_space<vmem>>, vector<8x128xf32>
      tpu.vector_store %arg5[%c0_18, %c0_19], %20 {strides = array<i32>} : memref<8x128xf32, #tpu.memory_space<vmem>>, vector<8x128xf32>,
      %c0_20 = arith.constant 0 : index
      %c0_21 = arith.constant 0 : index
      %22 = vector.load %arg8[%c0_20, %c0_21] : memref<8x128xf32, #tpu.memory_space<vmem>>, vector<8x128xf32>
      %23 = vector.shape_cast %22 : vector<8x128xf32> to vector<1x8x128xf32>
      %cst_22 = arith.constant dense<0.000000e+00> : vector<8x128xf32>
      %24 = vector.multi_reduction <add>, %23, %cst_22 [0] : vector<1x8x128xf32> to vector<8x128xf32>
      %c0_23 = arith.constant 0 : index
      %c0_24 = arith.constant 0 : index
      %25 = vector.load %arg6[%c0_23, %c0_24] : memref<8x128xf32, #tpu.memory_space<vmem>>, vector<8x128xf32>
      tpu.vector_store %arg6[%c0_23, %c0_24], %24 {strides = array<i32>} : memref<8x128xf32, #tpu.memory_space<vmem>>, vector<8x128xf32>,
    } else {
    }
    return
  }
  func.func @transform_0(%arg0: i32, %arg1: i32) -> (i32, i32) {
    %c1_i32 = arith.constant 1 : i32
    %0 = arith.muli %arg0, %c1_i32 : i32
    %1 = arith.addi %0, %arg1 : i32
    %c0_i32 = arith.constant 0 : i32
    %c0_i32_0 = arith.constant 0 : i32
    return %1, %c0_i32 : i32, i32
  }
  func.func @transform_1(%arg0: i32, %arg1: i32) -> (i32, i32) {
    %c1_i32 = arith.constant 1 : i32
    %0 = arith.muli %arg0, %c1_i32 : i32
    %1 = arith.addi %0, %arg1 : i32
    %c0_i32 = arith.constant 0 : i32
    %c0_i32_0 = arith.constant 0 : i32
    return %1, %c0_i32 : i32, i32
  }
  func.func @transform_2(%arg0: i32, %arg1: i32) -> (i32, i32) {
    %c1_i32 = arith.constant 1 : i32
    %0 = arith.muli %arg0, %c1_i32 : i32
    %1 = arith.addi %0, %arg1 : i32
    %c0_i32 = arith.constant 0 : i32
    %c0_i32_0 = arith.constant 0 : i32
    return %1, %c0_i32 : i32, i32
  }
  func.func @transform_3(%arg0: i32, %arg1: i32) -> (i32, i32) {
    %c0_i32 = arith.constant 0 : i32
    %c0_i32_0 = arith.constant 0 : i32
    return %arg0, %c0_i32 : i32, i32
  }
  func.func @transform_4(%arg0: i32, %arg1: i32) -> (i32, i32) {
    %c0_i32 = arith.constant 0 : i32
    %c0_i32_0 = arith.constant 0 : i32
    return %arg0, %c0_i32 : i32, i32
  }
}

</mosaic_0001>

<bundles_post_ra>
// kernel: tpu_custom_call.1
= control target key start
LH: loop header
LB: loop body
LE: loop exit
PB: predicated region body
PF: predicated region fallthrough
CT: control target
= control target key end

     0   :  { %10 = vsyncpa [#allocation5], 0  ;;  %s280_s0 = inlined_call_operand.hbm [shape: f32[8,128], index: 0, kind: input, shape index: {}]   ;;  %s281_s1 = inlined_call_operand.hbm [shape: f32[8,128], index: 1, kind: input, shape index: {}]   ;;  %s282_s2 = inlined_call_operand.hbm [shape: f32[8,128], index: 2, kind: input, shape index: {}]   ;;  %s283_s3 = inlined_call_operand.hbm [shape: f32[8,128], index: 3, kind: output, shape index: {0}]   ;;  %s284_s4 = inlined_call_operand.hbm [shape: f32[8,128], index: 4, kind: output, shape index: {1}]  }
   0x1   :  { %11 = vsyncpa [#allocation8], 0 }
   0x2   :  { %12 = vsyncpa [#allocation6], 0 }
   0x3   :  { %13 = vsyncpa [#allocation12], 0  ;;  %s235_s15 = smov [#allocation7]   ;;  %s236_s17 = smov [#allocation4]  }
   0x4   :  { %s36_s16 = sshll.u32 %s235_s15, 4  ;;  %s23_s18 = sshll.u32 %s236_s17, 4  ;;  %s37_s16 = int_to_ptr.vmem [resolvable:$true] %s36_s16  ;;  %s24_s18 = int_to_ptr.vmem [resolvable:$true] %s23_s18 }
   0x5   :  { %s135_s19 = scalar_lea.vmem %s37_s16, 128  ;;  %p140_p1 = scmp.lt.s32.totalorder %s37_s16, %s37_s16 }
   0x6   :  { %p136_p0 = scmp.ne.s32.totalorder %s37_s16, %s135_s19  ;;  %p141_p2 = scmp.lt.s32.totalorder %s135_s19, %s135_s19 }
   0x8   :  { %p142_p3 = por %p141_p2, %p140_p1 }
   0xa   :  { %p143_p4 = pnand %p142_p3, %p136_p0 }
   0xc   :  { %146 = shalt.err (!%p143_p4)
}
   0xd   :  { %39 = dma.hbm_to_vmem [thread:$0]  %s281_s1, 128, %s37_s16, [#allocation8]  }
   0xe   :  { %s155_s22 = scalar_lea.vmem %s24_s18, 128  ;;  %p160_p6 = scmp.lt.s32.totalorder %s24_s18, %s24_s18 }
   0xf   :  { %p156_p5 = scmp.ne.s32.totalorder %s24_s18, %s155_s22  ;;  %p161_p7 = scmp.lt.s32.totalorder %s155_s22, %s155_s22 }
  0x11   :  { %p162_p8 = por %p161_p7, %p160_p6 }
  0x13   :  { %p163_p9 = pnand %p162_p8, %p156_p5 }
  0x15   :  { %166 = shalt.err (!%p163_p9)
}
  0x16   :  { %26 = dma.hbm_to_vmem [thread:$0]  %s280_s0, 128, %s24_s18, [#allocation5]  }
  0x17   :  { %s237_s25 = smov [#allocation9]  }
  0x18   :  { %s49_s26 = sshll.u32 %s237_s25, 4  ;;  %s50_s26 = int_to_ptr.vmem [resolvable:$true] %s49_s26 }
  0x19   :  { %s175_s27 = scalar_lea.vmem %s50_s26, 128  ;;  %p180_p11 = scmp.lt.s32.totalorder %s50_s26, %s50_s26 }
  0x1a   :  { %p176_p10 = scmp.ne.s32.totalorder %s50_s26, %s175_s27  ;;  %p181_p12 = scmp.lt.s32.totalorder %s175_s27, %s175_s27 }
  0x1c   :  { %p182_p13 = por %p181_p12, %p180_p11 }
  0x1e   :  { %p183_p0 = pnand %p182_p13, %p176_p10 }
  0x20   :  { %186 = shalt.err (!%p183_p0)
}
  0x21   :  { %52 = dma.hbm_to_vmem [thread:$0]  %s282_s2, 128, %s50_s26, [#allocation8]  }
  0x22   :  { %227 = dma.done.wait [#allocation5], 128  }
  0x23   :  { %228 = vsyncadd [#allocation5], 4294967168 }
  0x24   :  { %229 = dma.done.wait [#allocation8], 256  }
  0x25   :  { %230 = vsyncadd [#allocation8], 4294967040  ;;  %s238_s29 = smov [#allocation11]   ;;  %v71_v0 = vld [vmem:[#allocation4] sm:$0xff]  ;;  %v72_v1 = vld [vmem:[#allocation7] sm:$0xff]  ;;  %s239_s30 = smov [#allocation10]  }
  0x26   :  { %s108_s0 = sshll.u32 %s238_s29, 4  ;;  %v73_v2 = vld [vmem:[#allocation9] sm:$0xff]  ;;  %v74_v3 = vsub.f32 %v71_v0, %v72_v1  ;;  %s98_s5 = sshll.u32 %s239_s30, 4  ;;  %s109_s0 = int_to_ptr.vmem [resolvable:$true] %s108_s0  ;;  %s99_s5 = int_to_ptr.vmem [resolvable:$true] %s98_s5 }
  0x27   :  { %91 = vst [vmem:[#allocation11] sm:$0xff] %v73_v2  ;;  %s187_s6 = scalar_lea.vmem %s109_s0, 128  ;;  %p192_p2 = scmp.lt.s32.totalorder %s109_s0, %s109_s0 }
  0x28   :  { %p188_p1 = scmp.ne.s32.totalorder %s109_s0, %s187_s6  ;;  %p193_p3 = scmp.lt.s32.totalorder %s187_s6, %s187_s6 }
  0x2a   :  { %p194_p4 = por %p193_p3, %p192_p2 }
  0x2c   :  { %p195_p5 = pnand %p194_p4, %p188_p1 }
  0x2e   :  { %198 = shalt.err (!%p195_p5)
}
  0x2f   :  { %111 = dma.vmem_to_hbm [thread:$0]  %s109_s0, 128, %s284_s4, [#allocation12]   ;;  %v76_v4 = vmul.f32 %v74_v3, %v74_v3 }
  0x30   :  { %s207_s8 = scalar_lea.vmem %s99_s5, 128  ;;  %p212_p7 = scmp.lt.s32.totalorder %s99_s5, %s99_s5 }
  0x31   :  { %v77_v5 = vmul.f32 %v76_v4, %v73_v2  ;;  %p208_p6 = scmp.ne.s32.totalorder %s99_s5, %s207_s8  ;;  %p213_p8 = scmp.lt.s32.totalorder %s207_s8, %s207_s8 }
  0x33   :  { %88 = vst [vmem:[#allocation10] sm:$0xff] %v77_v5  ;;  %p214_p9 = por %p213_p8, %p212_p7 }
  0x35   :  { %p215_p10 = pnand %p214_p9, %p208_p6 }
  0x37   :  { %218 = shalt.err (!%p215_p10)
}
  0x38   :  { %101 = dma.vmem_to_hbm [thread:$0]  %s99_s5, 128, %s283_s3, [#allocation6]  }
  0x39   :  { %231 = dma.done.wait [#allocation6], 128  }
  0x3a   :  { %232 = vsyncadd [#allocation6], 4294967168 }
  0x3b   :  { %233 = dma.done.wait [#allocation12], 128  }
  0x3c   :  { %234 = vsyncadd [#allocation12], 4294967168 }
  0x3d   :  { %118 = vsyncpa [#allocation5], 1 }
  0x3e   :  { %119 = vsyncpa [#allocation8], 1 }
  0x3f   :  { %120 = vsyncpa [#allocation6], 1 }
  0x40   :  { %121 = vsyncpa [#allocation12], 1 }

</bundles_post_ra>
